<compile_context>
chip_gen: v5e
topology: v5e:2x2
jax: 0.10.0
libtpu: 0.0.40
codegen_flags: <defaults>
</compile_context>

<pallas_src>
import functools

import jax
import jax.numpy as jnp
import numpy as np
from jax import lax
from jax.experimental import pallas as pl
from jax.experimental.pallas import tpu as pltpu

# Contract dim 0 (batch) of both operands: out[a, b] = sum_n lhs[n, a] * rhs[n, b].
_CONTRACT_BATCH = (((0,), (0,)), ((), ()))


def _round_up(x: int, m: int) -> int:
    return (x + m - 1) // m * m


def _coral_kernel(si_ref, sj_ref, ti_ref, tj_ref, out_ref,
                  acc_ref, ssum_i, ssum_j, tsum_i, tsum_j,
                  *, n_src: float, n_tgt: float, inv_scale: float):
    """Grid = (d_i, d_j, batch); batch (last axis) is the reduction axis."""
    k = pl.program_id(2)

    @pl.when(k == 0)
    def _init():
        acc_ref[...] = jnp.zeros_like(acc_ref)
        ssum_i[...] = jnp.zeros_like(ssum_i)
        ssum_j[...] = jnp.zeros_like(ssum_j)
        tsum_i[...] = jnp.zeros_like(tsum_i)
        tsum_j[...] = jnp.zeros_like(tsum_j)

    si = si_ref[...]          # (b_tile, d_tile)  source, feature-tile i
    sj = sj_ref[...]          # (b_tile, d_tile)  source, feature-tile j
    ti = ti_ref[...]          # (b_tile, d_tile)  target, feature-tile i
    tj = tj_ref[...]          # (b_tile, d_tile)  target, feature-tile j

    # Fused raw second moments: acc += X_s^T X_s - X_t^T X_t (f32 accumulate,
    # native-dtype MXU operands, contraction directly over the batch axis).
    acc_ref[...] += (
        lax.dot_general(si, sj, _CONTRACT_BATCH,
                        preferred_element_type=jnp.float32)
        - lax.dot_general(ti, tj, _CONTRACT_BATCH,
                          preferred_element_type=jnp.float32))

    # f32 column sums for the mean correction at finalize.
    ssum_i[...] += jnp.sum(si, axis=0, dtype=jnp.float32, keepdims=True)
    ssum_j[...] += jnp.sum(sj, axis=0, dtype=jnp.float32, keepdims=True)
    tsum_i[...] += jnp.sum(ti, axis=0, dtype=jnp.float32, keepdims=True)
    tsum_j[...] += jnp.sum(tj, axis=0, dtype=jnp.float32, keepdims=True)

    @pl.when(k == pl.num_programs(2) - 1)
    def _finalize():
        # cov = S - (colsum)^T (colsum) / N, all in f32.  Padding rows/cols are
        # zero so they contribute nothing to either term.
        s_corr = lax.dot_general(ssum_i[...], ssum_j[...], _CONTRACT_BATCH,
                                 preferred_element_type=jnp.float32)
        t_corr = lax.dot_general(tsum_i[...], tsum_j[...], _CONTRACT_BATCH,
                                 preferred_element_type=jnp.float32)
        diff = acc_ref[...] - s_corr * (1.0 / n_src) + t_corr * (1.0 / n_tgt)
        sq = diff * diff
        part = jnp.sum(jnp.sum(sq, axis=0, keepdims=True),
                       axis=1, keepdims=True)                 # (1, 1)
        # Lane-dense (8, 128) output block (unmasked vst); every element holds
        # this tile's scaled partial sum, the wrapper reads element [0, 0].
        out_ref[...] = jnp.broadcast_to(part * inv_scale, out_ref.shape)


def coral_loss(source, target, *, d_tile=None, b_tile=None):
    """CORAL loss between 2-D feature batches source (N, d) and target (M, d)."""
    if source.ndim != 2 or target.ndim != 2:
        raise ValueError("source/target must be 2-D [batch, features]")
    n_src, d = source.shape
    n_tgt, d_t = target.shape
    if d != d_t:
        raise ValueError("feature dims must match")

    # ---- tiling (generation-aware defaults) -------------------------------
    d_pad = _round_up(d, 128)
    if d_tile is None:
        # 256-wide tiles match the v6e/v7x 2x256^2 MXU; 128 is the v5e MXU
        # width / minimum lane tile (also used when d_pad % 256 != 0).
        d_tile = 256 if (d_pad % 256 == 0) else 128
    if d_pad % d_tile != 0:
        raise ValueError("d_tile must divide the padded feature dim")

    b0 = _round_up(max(n_src, n_tgt), 8)
    if b_tile is None:
        b_tile = min(512, b0)          # large batch tiles amortize step overhead
    b_pad = _round_up(b0, b_tile)

    def _pad(x):
        pr, pc = b_pad - x.shape[0], d_pad - x.shape[1]
        return x if (pr == 0 and pc == 0) else jnp.pad(x, ((0, pr), (0, pc)))

    src = _pad(source)
    tgt = _pad(target)

    n_i = d_pad // d_tile
    n_k = b_pad // b_tile
    grid = (n_i, n_i, n_k)

    kernel = functools.partial(
        _coral_kernel,
        n_src=float(n_src),
        n_tgt=float(n_tgt),
        inv_scale=1.0 / (4.0 * float(d) ** 4))

    in_block = (b_tile, d_tile)
    in_bytes = 2 * n_i * b_pad * d_pad * (source.dtype.itemsize
                                          + target.dtype.itemsize)
    out_bytes = (n_i * 8) * (n_i * 128) * 4
    cost = pl.CostEstimate(flops=4 * b_pad * d_pad * d_pad,
                           transcendentals=0,
                           bytes_accessed=in_bytes + out_bytes)

    partials = pl.pallas_call(
        kernel,
        out_shape=jax.ShapeDtypeStruct((n_i * 8, n_i * 128), jnp.float32),
        grid_spec=pltpu.PrefetchScalarGridSpec(
            num_scalar_prefetch=0,
            grid=grid,
            in_specs=[
                pl.BlockSpec(in_block, lambda i, j, k: (k, i)),  # source, tile i
                pl.BlockSpec(in_block, lambda i, j, k: (k, j)),  # source, tile j
                pl.BlockSpec(in_block, lambda i, j, k: (k, i)),  # target, tile i
                pl.BlockSpec(in_block, lambda i, j, k: (k, j)),  # target, tile j
            ],
            out_specs=pl.BlockSpec((8, 128), lambda i, j, k: (i, j)),
            scratch_shapes=[
                pltpu.VMEM((d_tile, d_tile), jnp.float32),   # fused S_src - S_tgt
                pltpu.VMEM((1, d_tile), jnp.float32),        # colsum(source), i
                pltpu.VMEM((1, d_tile), jnp.float32),        # colsum(source), j
                pltpu.VMEM((1, d_tile), jnp.float32),        # colsum(target), i
                pltpu.VMEM((1, d_tile), jnp.float32),        # colsum(target), j
            ]),
        compiler_params=pltpu.CompilerParams(
            dimension_semantics=("parallel", "parallel", "arbitrary")),
        cost_estimate=cost,
    )(src, src, tgt, tgt)

    # Element [0, 0] of each (8, 128) block holds that covariance tile's scaled
    # partial sum; reduce over tiles.
    return jnp.sum(partials[0::8, 0::128])


if __name__ == "__main__":
    key = jax.random.PRNGKey(0)
    k1, k2 = jax.random.split(key)
    # Small shapes consistent with the module: 8 source rows, 8 target rows,
    # 32 features (the module operates on 2-D [batch, features] activations).
    source = jax.random.normal(k1, (8, 32), dtype=jnp.float32)
    target = jax.random.normal(k2, (8, 32), dtype=jnp.float32) * 1.5 + 0.3

    loss = coral_loss(source, target)
    jax.block_until_ready(loss)

    # float64 numpy ground truth mirroring the PyTorch forward exactly.
    s64 = np.asarray(source, dtype=np.float64)
    t64 = np.asarray(target, dtype=np.float64)
    d = s64.shape[1]
    xm = s64.mean(axis=0, keepdims=True) - s64
    xc = xm.T @ xm
    xmt = t64.mean(axis=0, keepdims=True) - t64
    xct = xmt.T @ xmt
    ref = float(((xc - xct) ** 2).mean() / (4.0 * d * d))

    got = float(loss)
    # Tolerance leaves headroom for MXU bf16-pass f32 matmuls and for the
    # (mathematically identical) raw-moment reformulation of the covariance.
    assert np.isfinite(got), got
    assert abs(got - ref) <= 1e-2 * abs(ref) + 1e-7, (got, ref)
    print("KERNEL_OK")
</pallas_src>

<mosaic_0001>
module attributes {stable_mosaic.version = 11 : i64} {
  func.func @_coral_kernel(%arg0: i32, %arg1: i32, %arg2: i32, %arg3: memref<8x128xf32, #tpu.memory_space<vmem>>, %arg4: memref<8x128xf32, #tpu.memory_space<vmem>>, %arg5: memref<8x128xf32, #tpu.memory_space<vmem>>, %arg6: memref<8x128xf32, #tpu.memory_space<vmem>>, %arg7: memref<8x128xf32, #tpu.memory_space<vmem>>, %arg8: memref<128x128xf32, #tpu.memory_space<vmem>>, %arg9: memref<1x128xf32, #tpu.memory_space<vmem>>, %arg10: memref<1x128xf32, #tpu.memory_space<vmem>>, %arg11: memref<1x128xf32, #tpu.memory_space<vmem>>, %arg12: memref<1x128xf32, #tpu.memory_space<vmem>>) attributes {dimension_semantics = [#tpu.dimension_semantics<parallel>, #tpu.dimension_semantics<parallel>, #tpu.dimension_semantics<arbitrary>], iteration_bounds = array<i64: 1, 1, 1>, scalar_prefetch = 0 : i64, scratch_operands = 5 : i64, tpu.core_type = #tpu.core_type<tc>, window_params = [{transform_indices = @transform_0, window_bounds = array<i64: 8, 128>}, {transform_indices = @transform_1, window_bounds = array<i64: 8, 128>}, {transform_indices = @transform_2, window_bounds = array<i64: 8, 128>}, {transform_indices = @transform_3, window_bounds = array<i64: 8, 128>}, {transform_indices = @transform_4, window_bounds = array<i64: 8, 128>}]} {
    %c0_i32 = arith.constant 0 : i32
    %0 = arith.cmpi eq, %arg2, %c0_i32 : i32
    %1 = arith.extui %0 : i1 to i32
    %c0_i32_0 = arith.constant 0 : i32
    %2 = arith.cmpi ne, %1, %c0_i32_0 : i32
    scf.if %2 {
      %cst_35 = arith.constant 0.000000e+00 : f32
      %36 = vector.broadcast %cst_35 : f32 to vector<128x128xf32>
      %c0_36 = arith.constant 0 : index
      %c0_37 = arith.constant 0 : index
      %37 = vector.load %arg8[%c0_36, %c0_37] : memref<128x128xf32, #tpu.memory_space<vmem>>, vector<128x128xf32>
      tpu.vector_store %arg8[%c0_36, %c0_37], %36 {strides = array<i32>} : memref<128x128xf32, #tpu.memory_space<vmem>>, vector<128x128xf32>,
      %cst_38 = arith.constant 0.000000e+00 : f32
      %38 = vector.broadcast %cst_38 : f32 to vector<1x128xf32>
      %c0_39 = arith.constant 0 : index
      %c0_40 = arith.constant 0 : index
      %39 = vector.load %arg9[%c0_39, %c0_40] : memref<1x128xf32, #tpu.memory_space<vmem>>, vector<1x128xf32>
      tpu.vector_store %arg9[%c0_39, %c0_40], %38 {strides = array<i32>} : memref<1x128xf32, #tpu.memory_space<vmem>>, vector<1x128xf32>,
      %cst_41 = arith.constant 0.000000e+00 : f32
      %40 = vector.broadcast %cst_41 : f32 to vector<1x128xf32>
      %c0_42 = arith.constant 0 : index
      %c0_43 = arith.constant 0 : index
      %41 = vector.load %arg10[%c0_42, %c0_43] : memref<1x128xf32, #tpu.memory_space<vmem>>, vector<1x128xf32>
      tpu.vector_store %arg10[%c0_42, %c0_43], %40 {strides = array<i32>} : memref<1x128xf32, #tpu.memory_space<vmem>>, vector<1x128xf32>,
      %cst_44 = arith.constant 0.000000e+00 : f32
      %42 = vector.broadcast %cst_44 : f32 to vector<1x128xf32>
      %c0_45 = arith.constant 0 : index
      %c0_46 = arith.constant 0 : index
      %43 = vector.load %arg11[%c0_45, %c0_46] : memref<1x128xf32, #tpu.memory_space<vmem>>, vector<1x128xf32>
      tpu.vector_store %arg11[%c0_45, %c0_46], %42 {strides = array<i32>} : memref<1x128xf32, #tpu.memory_space<vmem>>, vector<1x128xf32>,
      %cst_47 = arith.constant 0.000000e+00 : f32
      %44 = vector.broadcast %cst_47 : f32 to vector<1x128xf32>
      %c0_48 = arith.constant 0 : index
      %c0_49 = arith.constant 0 : index
      %45 = vector.load %arg12[%c0_48, %c0_49] : memref<1x128xf32, #tpu.memory_space<vmem>>, vector<1x128xf32>
      tpu.vector_store %arg12[%c0_48, %c0_49], %44 {strides = array<i32>} : memref<1x128xf32, #tpu.memory_space<vmem>>, vector<1x128xf32>,
    } else {
    }
    %c0 = arith.constant 0 : index
    %c0_1 = arith.constant 0 : index
    %3 = vector.load %arg3[%c0, %c0_1] : memref<8x128xf32, #tpu.memory_space<vmem>>, vector<8x128xf32>
    %c0_2 = arith.constant 0 : index
    %c0_3 = arith.constant 0 : index
    %4 = vector.load %arg4[%c0_2, %c0_3] : memref<8x128xf32, #tpu.memory_space<vmem>>, vector<8x128xf32>
    %c0_4 = arith.constant 0 : index
    %c0_5 = arith.constant 0 : index
    %5 = vector.load %arg5[%c0_4, %c0_5] : memref<8x128xf32, #tpu.memory_space<vmem>>, vector<8x128xf32>
    %c0_6 = arith.constant 0 : index
    %c0_7 = arith.constant 0 : index
    %6 = vector.load %arg6[%c0_6, %c0_7] : memref<8x128xf32, #tpu.memory_space<vmem>>, vector<8x128xf32>
    %c0_8 = arith.constant 0 : index
    %c0_9 = arith.constant 0 : index
    %7 = vector.load %arg8[%c0_8, %c0_9] : memref<128x128xf32, #tpu.memory_space<vmem>>, vector<128x128xf32>
    %cst = arith.constant dense<0.000000e+00> : vector<128x128xf32>
    %8 = tpu.matmul %3, %4, %cst {dimension_numbers = #tpu.dot_dimension_numbers<[0], [0], [1], [1], [0, 1, 1, 1], [], []>} : vector<8x128xf32>, vector<8x128xf32>, vector<128x128xf32> -> vector<128x128xf32>
    %cst_10 = arith.constant dense<0.000000e+00> : vector<128x128xf32>
    %9 = tpu.matmul %5, %6, %cst_10 {dimension_numbers = #tpu.dot_dimension_numbers<[0], [0], [1], [1], [0, 1, 1, 1], [], []>} : vector<8x128xf32>, vector<8x128xf32>, vector<128x128xf32> -> vector<128x128xf32>
    %10 = arith.subf %8, %9 : vector<128x128xf32>
    %11 = arith.addf %7, %10 : vector<128x128xf32>
    %c0_11 = arith.constant 0 : index
    %c0_12 = arith.constant 0 : index
    %12 = vector.load %arg8[%c0_11, %c0_12] : memref<128x128xf32, #tpu.memory_space<vmem>>, vector<128x128xf32>
    tpu.vector_store %arg8[%c0_11, %c0_12], %11 {strides = array<i32>} : memref<128x128xf32, #tpu.memory_space<vmem>>, vector<128x128xf32>,
    %c0_13 = arith.constant 0 : index
    %c0_14 = arith.constant 0 : index
    %13 = vector.load %arg9[%c0_13, %c0_14] : memref<1x128xf32, #tpu.memory_space<vmem>>, vector<1x128xf32>
    %cst_15 = arith.constant dense<0.000000e+00> : vector<128xf32>
    %14 = vector.multi_reduction <add>, %3, %cst_15 [0] : vector<8x128xf32> to vector<128xf32>
    %15 = vector.shape_cast %14 : vector<128xf32> to vector<1x128xf32>
    %16 = arith.addf %13, %15 : vector<1x128xf32>
    %c0_16 = arith.constant 0 : index
    %c0_17 = arith.constant 0 : index
    %17 = vector.load %arg9[%c0_16, %c0_17] : memref<1x128xf32, #tpu.memory_space<vmem>>, vector<1x128xf32>
    tpu.vector_store %arg9[%c0_16, %c0_17], %16 {strides = array<i32>} : memref<1x128xf32, #tpu.memory_space<vmem>>, vector<1x128xf32>,
    %c0_18 = arith.constant 0 : index
    %c0_19 = arith.constant 0 : index
    %18 = vector.load %arg10[%c0_18, %c0_19] : memref<1x128xf32, #tpu.memory_space<vmem>>, vector<1x128xf32>
    %cst_20 = arith.constant dense<0.000000e+00> : vector<128xf32>
    %19 = vector.multi_reduction <add>, %4, %cst_20 [0] : vector<8x128xf32> to vector<128xf32>
    %20 = vector.shape_cast %19 : vector<128xf32> to vector<1x128xf32>
    %21 = arith.addf %18, %20 : vector<1x128xf32>
    %c0_21 = arith.constant 0 : index
    %c0_22 = arith.constant 0 : index
    %22 = vector.load %arg10[%c0_21, %c0_22] : memref<1x128xf32, #tpu.memory_space<vmem>>, vector<1x128xf32>
    tpu.vector_store %arg10[%c0_21, %c0_22], %21 {strides = array<i32>} : memref<1x128xf32, #tpu.memory_space<vmem>>, vector<1x128xf32>,
    %c0_23 = arith.constant 0 : index
    %c0_24 = arith.constant 0 : index
    %23 = vector.load %arg11[%c0_23, %c0_24] : memref<1x128xf32, #tpu.memory_space<vmem>>, vector<1x128xf32>
    %cst_25 = arith.constant dense<0.000000e+00> : vector<128xf32>
    %24 = vector.multi_reduction <add>, %5, %cst_25 [0] : vector<8x128xf32> to vector<128xf32>
    %25 = vector.shape_cast %24 : vector<128xf32> to vector<1x128xf32>
    %26 = arith.addf %23, %25 : vector<1x128xf32>
    %c0_26 = arith.constant 0 : index
    %c0_27 = arith.constant 0 : index
    %27 = vector.load %arg11[%c0_26, %c0_27] : memref<1x128xf32, #tpu.memory_space<vmem>>, vector<1x128xf32>
    tpu.vector_store %arg11[%c0_26, %c0_27], %26 {strides = array<i32>} : memref<1x128xf32, #tpu.memory_space<vmem>>, vector<1x128xf32>,
    %c0_28 = arith.constant 0 : index
    %c0_29 = arith.constant 0 : index
    %28 = vector.load %arg12[%c0_28, %c0_29] : memref<1x128xf32, #tpu.memory_space<vmem>>, vector<1x128xf32>
    %cst_30 = arith.constant dense<0.000000e+00> : vector<128xf32>
    %29 = vector.multi_reduction <add>, %6, %cst_30 [0] : vector<8x128xf32> to vector<128xf32>
    %30 = vector.shape_cast %29 : vector<128xf32> to vector<1x128xf32>
    %31 = arith.addf %28, %30 : vector<1x128xf32>
    %c0_31 = arith.constant 0 : index
    %c0_32 = arith.constant 0 : index
    %32 = vector.load %arg12[%c0_31, %c0_32] : memref<1x128xf32, #tpu.memory_space<vmem>>, vector<1x128xf32>
    tpu.vector_store %arg12[%c0_31, %c0_32], %31 {strides = array<i32>} : memref<1x128xf32, #tpu.memory_space<vmem>>, vector<1x128xf32>,
    %c0_i32_33 = arith.constant 0 : i32
    %33 = arith.cmpi eq, %arg2, %c0_i32_33 : i32
    %34 = arith.extui %33 : i1 to i32
    %c0_i32_34 = arith.constant 0 : i32
    %35 = arith.cmpi ne, %34, %c0_i32_34 : i32
    scf.if %35 {
      %c0_35 = arith.constant 0 : index
      %c0_36 = arith.constant 0 : index
      %36 = vector.load %arg9[%c0_35, %c0_36] : memref<1x128xf32, #tpu.memory_space<vmem>>, vector<1x128xf32>
      %c0_37 = arith.constant 0 : index
      %c0_38 = arith.constant 0 : index
      %37 = vector.load %arg10[%c0_37, %c0_38] : memref<1x128xf32, #tpu.memory_space<vmem>>, vector<1x128xf32>
      %cst_39 = arith.constant dense<0.000000e+00> : vector<128x128xf32>
      %38 = tpu.matmul %36, %37, %cst_39 {dimension_numbers = #tpu.dot_dimension_numbers<[0], [0], [1], [1], [0, 1, 1, 1], [], []>} : vector<1x128xf32>, vector<1x128xf32>, vector<128x128xf32> -> vector<128x128xf32>
      %c0_40 = arith.constant 0 : index
      %c0_41 = arith.constant 0 : index
      %39 = vector.load %arg11[%c0_40, %c0_41] : memref<1x128xf32, #tpu.memory_space<vmem>>, vector<1x128xf32>
      %c0_42 = arith.constant 0 : index
      %c0_43 = arith.constant 0 : index
      %40 = vector.load %arg12[%c0_42, %c0_43] : memref<1x128xf32, #tpu.memory_space<vmem>>, vector<1x128xf32>
      %cst_44 = arith.constant dense<0.000000e+00> : vector<128x128xf32>
      %41 = tpu.matmul %39, %40, %cst_44 {dimension_numbers = #tpu.dot_dimension_numbers<[0], [0], [1], [1], [0, 1, 1, 1], [], []>} : vector<1x128xf32>, vector<1x128xf32>, vector<128x128xf32> -> vector<128x128xf32>
      %c0_45 = arith.constant 0 : index
      %c0_46 = arith.constant 0 : index
      %42 = vector.load %arg8[%c0_45, %c0_46] : memref<128x128xf32, #tpu.memory_space<vmem>>, vector<128x128xf32>
      %cst_47 = arith.constant 1.250000e-01 : f32
      %43 = vector.broadcast %cst_47 : f32 to vector<128x128xf32>
      %44 = arith.mulf %38, %43 : vector<128x128xf32>
      %45 = arith.subf %42, %44 : vector<128x128xf32>
      %cst_48 = arith.constant 1.250000e-01 : f32
      %46 = vector.broadcast %cst_48 : f32 to vector<128x128xf32>
      %47 = arith.mulf %41, %46 : vector<128x128xf32>
      %48 = arith.addf %45, %47 : vector<128x128xf32>
      %49 = arith.mulf %48, %48 : vector<128x128xf32>
      %cst_49 = arith.constant dense<0.000000e+00> : vector<128xf32>
      %50 = vector.multi_reduction <add>, %49, %cst_49 [0] : vector<128x128xf32> to vector<128xf32>
      %51 = vector.shape_cast %50 : vector<128xf32> to vector<1x128xf32>
      %cst_50 = arith.constant dense<0.000000e+00> : vector<1xf32>
      %52 = vector.multi_reduction <add>, %51, %cst_50 [1] : vector<1x128xf32> to vector<1xf32>
      %53 = vector.shape_cast %52 : vector<1xf32> to vector<1x1xf32>
      %cst_51 = arith.constant 2.38418579E-7 : f32
      %54 = vector.broadcast %cst_51 : f32 to vector<1x1xf32>
      %55 = arith.mulf %53, %54 : vector<1x1xf32>
      %56 = vector.shape_cast %55 : vector<1x1xf32> to vector<1x1xf32>
      %57 = vector.broadcast %56 : vector<1x1xf32> to vector<8x128xf32>
      %c0_52 = arith.constant 0 : index
      %c0_53 = arith.constant 0 : index
      %58 = vector.load %arg7[%c0_52, %c0_53] : memref<8x128xf32, #tpu.memory_space<vmem>>, vector<8x128xf32>
      tpu.vector_store %arg7[%c0_52, %c0_53], %57 {strides = array<i32>} : memref<8x128xf32, #tpu.memory_space<vmem>>, vector<8x128xf32>,
    } else {
    }
    return
  }
  func.func @transform_0(%arg0: i32, %arg1: i32, %arg2: i32) -> (i32, i32) {
    %c0_i32 = arith.constant 0 : i32
    return %arg2, %arg0 : i32, i32
  }
  func.func @transform_1(%arg0: i32, %arg1: i32, %arg2: i32) -> (i32, i32) {
    %c0_i32 = arith.constant 0 : i32
    return %arg2, %arg1 : i32, i32
  }
  func.func @transform_2(%arg0: i32, %arg1: i32, %arg2: i32) -> (i32, i32) {
    %c0_i32 = arith.constant 0 : i32
    return %arg2, %arg0 : i32, i32
  }
  func.func @transform_3(%arg0: i32, %arg1: i32, %arg2: i32) -> (i32, i32) {
    %c0_i32 = arith.constant 0 : i32
    return %arg2, %arg1 : i32, i32
  }
  func.func @transform_4(%arg0: i32, %arg1: i32, %arg2: i32) -> (i32, i32) {
    %c0_i32 = arith.constant 0 : i32
    return %arg0, %arg1 : i32, i32
  }
}

</mosaic_0001>

<bundles_post_ra>
// kernel: tpu_custom_call.1
= control target key start
LH: loop header
LB: loop body
LE: loop exit
PB: predicated region body
PF: predicated region fallthrough
CT: control target
= control target key end

     0   :  { %9 = vsyncpa [#allocation8], 0  ;;  %s1249_s0 = inlined_call_operand.hbm [shape: f32[8,128], index: 0, kind: input, shape index: {}]   ;;  %s1250_s1 = inlined_call_operand.hbm [shape: f32[8,128], index: 1, kind: input, shape index: {}]   ;;  %s1251_s2 = inlined_call_operand.hbm [shape: f32[8,128], index: 2, kind: input, shape index: {}]   ;;  %s1252_s3 = inlined_call_operand.hbm [shape: f32[8,128], index: 3, kind: input, shape index: {}]   ;;  %s1253_s4 = inlined_call_operand.hbm [shape: f32[8,128], index: 4, kind: output, shape index: {}]  }
   0x1   :  { %10 = vsyncpa [#allocation11], 0 }
   0x2   :  { %11 = vsyncpa [#allocation14], 0  ;;  %s29_s17 = sshll.u32 %s1250_s1, 4  ;;  %s30_s17 = int_to_ptr.hbm [resolvable:$true] %s29_s17 }
   0x3   :  { %12 = vsyncpa [#allocation9], 0  ;;  %s1137_s18 = smov [#allocation10]   ;;  %s18_s22 = sshll.u32 %s1249_s0, 4  ;;  %s19_s22 = int_to_ptr.hbm [resolvable:$true] %s18_s22 }
   0x4   :  { %s31_s19 = sshll.u32 %s1137_s18, 4  ;;  %s1138_s23 = smov [#allocation7]   ;;  %s32_s19 = int_to_ptr.vmem [resolvable:$true] %s31_s19 }
   0x5   :  { %34 = dma.hbm_to_vmem [thread:$0]  %s30_s17, 128, %s32_s19, [#allocation11]  }
   0x6   :  { %s20_s24 = sshll.u32 %s1138_s23, 4  ;;  %s40_s27 = sshll.u32 %s1251_s2, 4  ;;  %s21_s24 = int_to_ptr.vmem [resolvable:$true] %s20_s24  ;;  %s41_s27 = int_to_ptr.hbm [resolvable:$true] %s40_s27 }
   0x7   :  { %23 = dma.hbm_to_vmem [thread:$0]  %s19_s22, 128, %s21_s24, [#allocation8]  }
   0x8   :  { %s51_s29 = sshll.u32 %s1252_s3, 4  ;;  %s1139_s30 = smov [#allocation12]   ;;  %s52_s29 = int_to_ptr.hbm [resolvable:$true] %s51_s29 }
   0x9   :  { %s42_s5 = sshll.u32 %s1139_s30, 4  ;;  %s1140_s0 = smov [#allocation13]   ;;  %s43_s5 = int_to_ptr.vmem [resolvable:$true] %s42_s5 }
   0xa   :  { %45 = dma.hbm_to_vmem [thread:$0]  %s41_s27, 128, %s43_s5, [#allocation11]  }
   0xb   :  { %s53_s6 = sshll.u32 %s1140_s0, 4  ;;  %s54_s6 = int_to_ptr.vmem [resolvable:$true] %s53_s6 }
   0xc   :  { %56 = dma.hbm_to_vmem [thread:$0]  %s52_s29, 128, %s54_s6, [#allocation14]  }
   0xd   :  { %1129 = dma.done.wait [#allocation8], 128  }
   0xe   :  { %1130 = vsyncadd [#allocation8], 4294967168 }
   0xf   :  { %1131 = dma.done.wait [#allocation11], 256  }
  0x10   :  { %1132 = vsyncadd [#allocation11], 4294967040 }
  0x11   :  { %1133 = dma.done.wait [#allocation14], 128  }
  0x12   :  { %1134 = vsyncadd [#allocation14], 4294967168  ;;  %v1141_v0 = vmov 0.0   ;;  %v97_v1 = vld [vmem:[#allocation7] sm:$0xff]  ;;  %v98_v2 = vld [vmem:[#allocation10] sm:$0xff]  ;;  %vm578_vm0 = vcmask 1040384  }
  0x13   :  { %93 = vst [vmem:[#allocation3] sm:$0x1] %v1141_v0  ;;  %v466_v3 = vrot.slane %v98_v2, 4  ;;  %117 = vxpose.xlu1.b32.start.end [1/1] (short) %v97_v1, 128  ;;  %v457_v4 = vrot.slane %v97_v1, 4  ;;  %213 = vmatpush.msra.mxu0 %v98_v2  ;;  %v99_v20 = vld [vmem:[#allocation12] sm:$0xff]  ;;  %vm149_vm1 = vcmask 64512  }
  0x14   :  { %94 = vst [vmem:[#allocation4] sm:$0x1] %v1141_v0  ;;  %v475_v21 = vrot.slane %v99_v20, 4  ;;  %vm529_vm2 = vcmask 7168   ;;  %v100_v53 = vld [vmem:[#allocation13] sm:$0xff]  ;;  %s1142_s2 = smov [#allocation15]  }
  0x15   :  { %95 = vst [vmem:[#allocation5] sm:$0x1] %v1141_v0  ;;  %v467_v5 = vadd.f32 %v466_v3, %v98_v2  ;;  %v458_v6 = vadd.f32 %v457_v4, %v97_v1  ;;  %358 = vmatpush.msra.mxu1 %v100_v53  ;;  %v484_v55 = vrot.slane %v100_v53, 4  ;;  %s923_s3 = sshll.u32 %s1142_s2, 4  ;;  %s925_s9 = sshll.u32 %s1253_s4, 4  ;;  %s924_s3 = int_to_ptr.vmem [resolvable:$true] %s923_s3  ;;  %s926_s9 = int_to_ptr.hbm [resolvable:$true] %s925_s9 }
  0x16   :  { %96 = vst [vmem:[#allocation6] sm:$0x1] %v1141_v0  ;;  %v476_v22 = vadd.f32 %v475_v21, %v99_v20 }
  0x17   :  { %v468_v7 = vrot.slane %v467_v5, 2  ;;  %v459_v8 = vrot.slane %v458_v6, 2  ;;  %v485_v56 = vadd.f32 %v484_v55, %v100_v53 }
  0x18   :  { %v477_v23 = vrot.slane %v476_v22, 2 }
  0x19   :  { %v469_v9 = vadd.f32 %v468_v7, %v467_v5  ;;  %v460_v10 = vadd.f32 %v459_v8, %v458_v6  ;;  %v486_v57 = vrot.slane %v485_v56, 2 }
  0x1a   :  { %v456_v13 = vld [vmem:[#allocation3] sm:$0x1]  ;;  %v478_v24 = vadd.f32 %v477_v23, %v476_v22 }
  0x1b   :  { %v470_v11 = vrot.slane %v469_v9, 1  ;;  %v461_v12 = vrot.slane %v460_v10, 1  ;;  %v465_v14 = vld [vmem:[#allocation4] sm:$0x1]  ;;  %v487_v59 = vadd.f32 %v486_v57, %v485_v56 }
  0x1c   :  { %v479_v25 = vrot.slane %v478_v24, 1  ;;  %v474_v27 = vld [vmem:[#allocation5] sm:$0x1] }
  0x1d   :  { %v471_v15 = vadd.f32 %v470_v11, %v469_v9  ;;  %v462_v16 = vadd.f32 %v461_v12, %v460_v10  ;;  %v488_v61 = vrot.slane %v487_v59, 1  ;;  %v483_v62 = vld [vmem:[#allocation6] sm:$0x1] }
  0x1e   :  { %v480_v26 = vadd.f32 %v479_v25, %v478_v24 }
  0x1f   :  { %v463_v17 = vadd.f32 %v462_v16, %v456_v13  ;;  %v472_v18 = vadd.f32 %v471_v15, %v465_v14  ;;  %v489_v63 = vadd.f32 %v488_v61, %v487_v59 }
  0x20   :  { %v481_v28 = vadd.f32 %v480_v26, %v474_v27 }
  0x21   :  { %464 = vst [vmem:[#allocation3] sm:$0x1] %v463_v17  ;;  %v490_v0 = vadd.f32 %v489_v63, %v483_v62 }
  0x22   :  { %473 = vst [vmem:[#allocation4] sm:$0x1] %v472_v18 }
  0x23   :  { %482 = vst [vmem:[#allocation5] sm:$0x1] %v481_v28 }
  0x24   :  { %491 = vst [vmem:[#allocation6] sm:$0x1] %v490_v0 }
  0x28   :  { %v495_v19 = vld [vmem:[#allocation3] sm:$0x1] }
  0x29   :  { %497 = vxpose.xlu0.b32.start.end [1/1] (short) %v495_v19, 128  ;;  %v496_v30 = vld [vmem:[#allocation4] sm:$0x1] }
  0x2a   :  { %v647_v29 = vld [vmem:[#allocation5] sm:$0x1]  ;;  %969 = vmatpush.msk.msra.mxu2 %vm578_vm0, %v496_v30 }
  0x2b   :  { %v648_v3 = vld [vmem:[#allocation6] sm:$0x1] }
  0x2c   :  { %986 = vmatpush.msk.msra.mxu3 %vm578_vm0, %v648_v3 }
  0x93   :  { %263 = vxpose.xlu1.b32.start.end [1/1] (short) %v99_v20, 128 }
  0xa9   :  { %649 = vxpose.xlu0.b32.start.end [1/1] (short) %v647_v29, 128 }
  0xb7   :  { %v133_v31 = vpop.trf.xlu1 }
  0xb8   :  { %937 = vmatmul.msk.f32.vlgmr.msra.gmra.mxu0 %vm149_vm1, %v133_v31 }
  0xbf   :  { %v134_v32 = vpop.trf.xlu1 }
  0xc0   :  { %938 = vmatmul.msk.f32.gmra.mxu0 %vm149_vm1, %v134_v32 }
  0xc7   :  { %v135_v33 = vpop.trf.xlu1 }
  0xc8   :  { %939 = vmatmul.msk.f32.gmra.mxu0 %vm149_vm1, %v135_v33 }
  0xcd   :  { %v513_v34 = vpop.trf.xlu0 }
  0xce   :  { %970 = vmatmul.msk.f32.vlgmr.msra.gmra.mxu2 %vm529_vm2, %v513_v34 }
  0xcf   :  { %v136_v35 = vpop.trf.xlu1 }
  0xd0   :  { %940 = vmatmul.msk.f32.gmra.mxu0 %vm149_vm1, %v136_v35 }
  0xd5   :  { %v514_v36 = vpop.trf.xlu0 }
  0xd6   :  { %971 = vmatmul.msk.f32.gmra.mxu2 %vm529_vm2, %v514_v36 }
  0xd7   :  { %v137_v37 = vpop.trf.xlu1 }
  0xd8   :  { %941 = vmatmul.msk.f32.gmra.mxu0 %vm149_vm1, %v137_v37 }
  0xdd   :  { %v515_v38 = vpop.trf.xlu0 }
  0xde   :  { %972 = vmatmul.msk.f32.gmra.mxu2 %vm529_vm2, %v515_v38 }
  0xdf   :  { %v138_v39 = vpop.trf.xlu1 }
  0xe0   :  { %942 = vmatmul.msk.f32.gmra.mxu0 %vm149_vm1, %v138_v39 }
  0xe5   :  { %v516_v40 = vpop.trf.xlu0 }
  0xe6   :  { %973 = vmatmul.msk.f32.gmra.mxu2 %vm529_vm2, %v516_v40 }
  0xe7   :  { %v139_v41 = vpop.trf.xlu1 }
  0xe8   :  { %943 = vmatmul.msk.f32.gmra.mxu0 %vm149_vm1, %v139_v41 }
  0xed   :  { %v517_v42 = vpop.trf.xlu0 }
  0xee   :  { %974 = vmatmul.msk.f32.gmra.mxu2 %vm529_vm2, %v517_v42 }
  0xef   :  { %v140_v43 = vpop.trf.xlu1 }
  0xf0   :  { %944 = vmatmul.msk.f32.gmra.mxu0 %vm149_vm1, %v140_v43 }
  0xf5   :  { %v518_v44 = vpop.trf.xlu0 }
  0xf6   :  { %975 = vmatmul.msk.f32.gmra.mxu2 %vm529_vm2, %v518_v44 }
  0xf7   :  { %v141_v45 = vpop.trf.xlu1 }
  0xf8   :  { %945 = vmatmul.msk.f32.gmra.mxu0 %vm149_vm1, %v141_v45 }
  0xfd   :  { %v519_v46 = vpop.trf.xlu0 }
  0xfe   :  { %976 = vmatmul.msk.f32.gmra.mxu2 %vm529_vm2, %v519_v46 }
  0xff   :  { %v142_v47 = vpop.trf.xlu1 }
 0x100   :  { %946 = vmatmul.msk.f32.gmra.mxu0 %vm149_vm1, %v142_v47 }
 0x105   :  { %v520_v48 = vpop.trf.xlu0 }
 0x106   :  { %977 = vmatmul.msk.f32.gmra.mxu2 %vm529_vm2, %v520_v48 }
 0x107   :  { %v143_v49 = vpop.trf.xlu1 }
 0x108   :  { %947 = vmatmul.msk.f32.gmra.mxu0 %vm149_vm1, %v143_v49 }
 0x10d   :  { %v521_v50 = vpop.trf.xlu0 }
 0x10e   :  { %978 = vmatmul.msk.f32.gmra.mxu2 %vm529_vm2, %v521_v50 }
 0x10f   :  { %v144_v51 = vpop.trf.xlu1 }
 0x110   :  { %948 = vmatmul.msk.f32.gmra.mxu0 %vm149_vm1, %v144_v51 }
 0x115   :  { %v522_v52 = vpop.trf.xlu0 }
 0x116   :  { %979 = vmatmul.msk.f32.gmra.mxu2 %vm529_vm2, %v522_v52 }
 0x117   :  { %v145_v54 = vpop.trf.xlu1 }
 0x118   :  { %949 = vmatmul.msk.f32.gmra.mxu0 %vm149_vm1, %v145_v54 }
 0x11d   :  { %v523_v58 = vpop.trf.xlu0 }
 0x11e   :  { %980 = vmatmul.msk.f32.gmra.mxu2 %vm529_vm2, %v523_v58 }
 0x11f   :  { %v146_v60 = vpop.trf.xlu1 }
 0x120   :  { %950 = vmatmul.msk.f32.gmra.mxu0 %vm149_vm1, %v146_v60 }
 0x125   :  { %v524_v1 = vpop.trf.xlu0 }
 0x126   :  { %981 = vmatmul.msk.f32.gmra.mxu2 %vm529_vm2, %v524_v1 }
 0x127   :  { %v147_v2 = vpop.trf.xlu1 }
 0x128   :  { %951 = vmatmul.msk.f32.gmra.mxu0 %vm149_vm1, %v147_v2 }
 0x12d   :  { %v525_v4 = vpop.trf.xlu0 }
 0x12e   :  { %982 = vmatmul.msk.f32.gmra.mxu2 %vm529_vm2, %v525_v4 }
 0x12f   :  { %v148_v5 = vpop.trf.xlu1 }
 0x130   :  { %952 = vmatmul.msk.f32.gmra.mxu0 %vm149_vm1, %v148_v5 }
 0x135   :  { %v526_v6 = vpop.trf.xlu0  ;;  %v215_v37 = vpop.f32.mrf.mxu0 }
 0x136   :  { %983 = vmatmul.msk.f32.gmra.mxu2 %vm529_vm2, %v526_v6 }
 0x137   :  { %v279_v7 = vpop.trf.xlu1 }
 0x138   :  { %953 = vmatmul.msk.f32.vlgmr.msra.gmra.mxu1 %vm149_vm1, %v279_v7 }
 0x13d   :  { %v527_v8 = vpop.trf.xlu0  ;;  %v218_v45 = vpop.f32.mrf.mxu0 }
 0x13e   :  { %984 = vmatmul.msk.f32.gmra.mxu2 %vm529_vm2, %v527_v8 }
 0x13f   :  { %v280_v9 = vpop.trf.xlu1 }
 0x140   :  { %954 = vmatmul.msk.f32.gmra.mxu1 %vm149_vm1, %v280_v9 }
 0x145   :  { %v528_v10 = vpop.trf.xlu0  ;;  %v221_v53 = vpop.f32.mrf.mxu0 }
 0x146   :  { %985 = vmatmul.msk.f32.gmra.mxu2 %vm529_vm2, %v528_v10 }
 0x147   :  { %v281_v11 = vpop.trf.xlu1 }
 0x148   :  { %955 = vmatmul.msk.f32.gmra.mxu1 %vm149_vm1, %v281_v11 }
 0x14d   :  { %v665_v12 = vpop.trf.xlu0  ;;  %v224_v60 = vpop.f32.mrf.mxu0 }
 0x14e   :  { %987 = vmatmul.msk.f32.vlgmr.msra.gmra.mxu3 %vm529_vm2, %v665_v12 }
 0x14f   :  { %v282_v13 = vpop.trf.xlu1 }
 0x150   :  { %956 = vmatmul.msk.f32.gmra.mxu1 %vm149_vm1, %v282_v13 }
 0x151   :  { %v599_v36 = vpop.f32.mrf.mxu2 }
 0x152   :  { %v813_v43 = vmul.f32 0.125, %v599_v36 }
 0x155   :  { %v666_v14 = vpop.trf.xlu0  ;;  %v227_v5 = vpop.f32.mrf.mxu0 }
 0x156   :  { %988 = vmatmul.msk.f32.gmra.mxu3 %vm529_vm2, %v666_v14 }
 0x157   :  { %v283_v15 = vpop.trf.xlu1 }
 0x158   :  { %957 = vmatmul.msk.f32.gmra.mxu1 %vm149_vm1, %v283_v15 }
 0x159   :  { %v602_v40 = vpop.f32.mrf.mxu2 }
 0x15a   :  { %v814_v49 = vmul.f32 0.125, %v602_v40 }
 0x15d   :  { %v667_v16 = vpop.trf.xlu0 }
 0x15e   :  { %989 = vmatmul.msk.f32.gmra.mxu3 %vm529_vm2, %v667_v16  ;;  %v230_v16 = vpop.f32.mrf.mxu0 }
 0x15f   :  { %v284_v17 = vpop.trf.xlu1 }
 0x160   :  { %958 = vmatmul.msk.f32.gmra.mxu1 %vm149_vm1, %v284_v17 }
 0x161   :  { %v605_v51 = vpop.f32.mrf.mxu2 }
 0x162   :  { %v815_v56 = vmul.f32 0.125, %v605_v51 }
 0x165   :  { %v668_v18 = vpop.trf.xlu0 }
 0x166   :  { %990 = vmatmul.msk.f32.gmra.mxu3 %vm529_vm2, %v668_v18 }
 0x167   :  { %v285_v19 = vpop.trf.xlu1 }
 0x168   :  { %959 = vmatmul.msk.f32.gmra.mxu1 %vm149_vm1, %v285_v19 }
 0x169   :  { %v608_v59 = vpop.f32.mrf.mxu2 }
 0x16a   :  { %v816_v62 = vmul.f32 0.125, %v608_v59 }
 0x16d   :  { %v669_v20 = vpop.trf.xlu0 }
 0x16e   :  { %991 = vmatmul.msk.f32.gmra.mxu3 %vm529_vm2, %v669_v20 }
 0x16f   :  { %v286_v21 = vpop.trf.xlu1 }
 0x170   :  { %960 = vmatmul.msk.f32.gmra.mxu1 %vm149_vm1, %v286_v21 }
 0x171   :  { %v611_v3 = vpop.f32.mrf.mxu2 }
 0x172   :  { %v817_v7 = vmul.f32 0.125, %v611_v3 }
 0x175   :  { %v670_v22 = vpop.trf.xlu0 }
 0x176   :  { %992 = vmatmul.msk.f32.gmra.mxu3 %vm529_vm2, %v670_v22 }
 0x177   :  { %v287_v23 = vpop.trf.xlu1 }
 0x178   :  { %961 = vmatmul.msk.f32.gmra.mxu1 %vm149_vm1, %v287_v23 }
 0x179   :  { %v614_v18 = vpop.f32.mrf.mxu2 }
 0x17d   :  { %v671_v24 = vpop.trf.xlu0 }
 0x17e   :  { %993 = vmatmul.msk.f32.gmra.mxu3 %vm529_vm2, %v671_v24 }
 0x17f   :  { %v288_v25 = vpop.trf.xlu1 }
 0x180   :  { %962 = vmatmul.msk.f32.gmra.mxu1 %vm149_vm1, %v288_v25 }
 0x185   :  { %v672_v26 = vpop.trf.xlu0 }
 0x186   :  { %994 = vmatmul.msk.f32.gmra.mxu3 %vm529_vm2, %v672_v26  ;;  %v233_v26 = vpop.f32.mrf.mxu0 }
 0x187   :  { %v289_v27 = vpop.trf.xlu1 }
 0x188   :  { %963 = vmatmul.msk.f32.gmra.mxu1 %vm149_vm1, %v289_v27 }
 0x18d   :  { %v673_v28 = vpop.trf.xlu0 }
 0x18e   :  { %995 = vmatmul.msk.f32.gmra.mxu3 %vm529_vm2, %v673_v28  ;;  %v617_v28 = vpop.f32.mrf.mxu2 }
 0x18f   :  { %v290_v29 = vpop.trf.xlu1 }
 0x190   :  { %964 = vmatmul.msk.f32.gmra.mxu1 %vm149_vm1, %v290_v29 }
 0x195   :  { %v674_v30 = vpop.trf.xlu0 }
 0x196   :  { %996 = vmatmul.msk.f32.gmra.mxu3 %vm529_vm2, %v674_v30 }
 0x197   :  { %v291_v31 = vpop.trf.xlu1 }
 0x198   :  { %965 = vmatmul.msk.f32.gmra.mxu1 %vm149_vm1, %v291_v31 }
 0x19d   :  { %v675_v32 = vpop.trf.xlu0 }
 0x19e   :  { %997 = vmatmul.msk.f32.gmra.mxu3 %vm529_vm2, %v675_v32 }
 0x19f   :  { %v292_v33 = vpop.trf.xlu1 }
 0x1a0   :  { %966 = vmatmul.msk.f32.gmra.mxu1 %vm149_vm1, %v292_v33 }
 0x1a5   :  { %v676_v34 = vpop.trf.xlu0 }
 0x1a6   :  { %998 = vmatmul.msk.f32.gmra.mxu3 %vm529_vm2, %v676_v34 }
 0x1a7   :  { %v293_v35 = vpop.trf.xlu1 }
 0x1a8   :  { %967 = vmatmul.msk.f32.gmra.mxu1 %vm149_vm1, %v293_v35  ;;  %v236_v35 = vpop.f32.mrf.mxu0 }
 0x1ad   :  { %v677_v38 = vpop.trf.xlu0 }
 0x1ae   :  { %999 = vmatmul.msk.f32.gmra.mxu3 %vm529_vm2, %v677_v38 }
 0x1af   :  { %v294_v39 = vpop.trf.xlu1 }
 0x1b0   :  { %968 = vmatmul.msk.f32.gmra.mxu1 %vm149_vm1, %v294_v39 }
 0x1b5   :  { %v360_v41 = vpop.f32.mrf.mxu1  ;;  %v678_v42 = vpop.trf.xlu0 }
 0x1b6   :  { %v408_v44 = vsub.f32 %v215_v37, %v360_v41  ;;  %1000 = vmatmul.msk.f32.gmra.mxu3 %vm529_vm2, %v678_v42  ;;  %v620_v37 = vpop.f32.mrf.mxu2  ;;  %v239_v42 = vpop.f32.mrf.mxu0 }
 0x1b8   :  { %v829_v46 = vsub.f32 %v408_v44, %v813_v43 }
 0x1bd   :  { %v363_v47 = vpop.f32.mrf.mxu1  ;;  %v679_v48 = vpop.trf.xlu0 }
 0x1be   :  { %v409_v50 = vsub.f32 %v218_v45, %v363_v47  ;;  %1001 = vmatmul.msk.f32.gmra.mxu3 %vm529_vm2, %v679_v48  ;;  %v623_v43 = vpop.f32.mrf.mxu2 }
 0x1c0   :  { %v830_v52 = vsub.f32 %v409_v50, %v814_v49 }
 0x1c5   :  { %v366_v54 = vpop.f32.mrf.mxu1  ;;  %v680_v55 = vpop.trf.xlu0 }
 0x1c6   :  { %v410_v57 = vsub.f32 %v221_v53, %v366_v54  ;;  %1002 = vmatmul.msk.f32.gmra.mxu3 %vm529_vm2, %v680_v55  ;;  %v626_v47 = vpop.f32.mrf.mxu2 }
 0x1c8   :  { %v831_v58 = vsub.f32 %v410_v57, %v815_v56 }
 0x1cd   :  { %v369_v61 = vpop.f32.mrf.mxu1 }
 0x1ce   :  { %v411_v63 = vsub.f32 %v224_v60, %v369_v61 }
 0x1d0   :  { %v832_v0 = vsub.f32 %v411_v63, %v816_v62  ;;  %v818_v63 = vmul.f32 0.125, %v614_v18 }
 0x1d1   :  { %v749_v1 = vpop.f32.mrf.mxu3 }
 0x1d2   :  { %v845_v2 = vmul.f32 0.125, %v749_v1 }
 0x1d4   :  { %v861_v4 = vadd.f32 %v845_v2, %v829_v46  ;;  %v242_v46 = vpop.f32.mrf.mxu0 }
 0x1d5   :  { %v372_v6 = vpop.f32.mrf.mxu1 }
 0x1d6   :  { %v412_v8 = vsub.f32 %v227_v5, %v372_v6  ;;  %v877_v13 = vmul.f32 %v861_v4, %v861_v4  ;;  %v819_v4 = vmul.f32 0.125, %v617_v28 }
 0x1d8   :  { %v833_v9 = vsub.f32 %v412_v8, %v817_v7 }
 0x1d9   :  { %v752_v10 = vpop.f32.mrf.mxu3 }
 0x1da   :  { %v846_v11 = vmul.f32 0.125, %v752_v10  ;;  %v820_v10 = vmul.f32 0.125, %v620_v37 }
 0x1dc   :  { %v862_v12 = vadd.f32 %v846_v11, %v830_v52  ;;  %v245_v51 = vpop.f32.mrf.mxu0  ;;  %v629_v52 = vpop.f32.mrf.mxu2 }
 0x1dd   :  { %v375_v15 = vpop.f32.mrf.mxu1 }
 0x1de   :  { %v878_v14 = vmul.f32 %v862_v12, %v862_v12  ;;  %v413_v62 = vsub.f32 %v230_v16, %v375_v15 }
 0x1e0   :  { %v893_v17 = vadd.f32 %v878_v14, %v877_v13  ;;  %v834_v6 = vsub.f32 %v413_v62, %v818_v63 }
 0x1e1   :  { %v755_v19 = vpop.f32.mrf.mxu3 }
 0x1e2   :  { %v847_v20 = vmul.f32 0.125, %v755_v19 }
 0x1e4   :  { %v863_v21 = vadd.f32 %v847_v20, %v831_v58  ;;  %v248_v55 = vpop.f32.mrf.mxu0  ;;  %v632_v56 = vpop.f32.mrf.mxu2 }
 0x1e5   :  { %v378_v24 = vpop.f32.mrf.mxu1 }
 0x1e6   :  { %v879_v22 = vmul.f32 %v863_v21, %v863_v21 }
 0x1e8   :  { %v894_v23 = vadd.f32 %v893_v17, %v879_v22  ;;  %v821_v17 = vmul.f32 0.125, %v623_v43 }
 0x1e9   :  { %v758_v25 = vpop.f32.mrf.mxu3 }
 0x1ea   :  { %v848_v27 = vmul.f32 0.125, %v758_v25 }
 0x1ec   :  { %v864_v29 = vadd.f32 %v848_v27, %v832_v0  ;;  %v251_v59 = vpop.f32.mrf.mxu0  ;;  %v635_v60 = vpop.f32.mrf.mxu2  ;;  %v414_v0 = vsub.f32 %v233_v26, %v378_v24 }
 0x1ed   :  { %v381_v34 = vpop.f32.mrf.mxu1 }
 0x1ee   :  { %v880_v30 = vmul.f32 %v864_v29, %v864_v29  ;;  %v415_v7 = vsub.f32 %v236_v35, %v381_v34  ;;  %v835_v11 = vsub.f32 %v414_v0, %v819_v4 }
 0x1f0   :  { %v895_v31 = vadd.f32 %v894_v23, %v880_v30  ;;  %v836_v19 = vsub.f32 %v415_v7, %v820_v10  ;;  %v822_v23 = vmul.f32 0.125, %v626_v47  ;;  %v823_v30 = vmul.f32 0.125, %v629_v52 }
 0x1f1   :  { %v761_v32 = vpop.f32.mrf.mxu3 }
 0x1f2   :  { %v849_v33 = vmul.f32 0.125, %v761_v32 }
 0x1f4   :  { %v865_v36 = vadd.f32 %v849_v33, %v833_v9  ;;  %v254_v3 = vpop.f32.mrf.mxu0  ;;  %v638_v5 = vpop.f32.mrf.mxu2 }
 0x1f5   :  { %v384_v41 = vpop.f32.mrf.mxu1 }
 0x1f6   :  { %v881_v38 = vmul.f32 %v865_v36, %v865_v36  ;;  %v416_v12 = vsub.f32 %v239_v42, %v384_v41 }
 0x1f8   :  { %v896_v39 = vadd.f32 %v895_v31, %v881_v38  ;;  %v837_v18 = vsub.f32 %v416_v12, %v821_v17 }
 0x1f9   :  { %v764_v40 = vpop.f32.mrf.mxu3 }
 0x1fa   :  { %v850_v1 = vmul.f32 0.125, %v764_v40  ;;  %v824_v40 = vmul.f32 0.125, %v632_v56 }
 0x1fc   :  { %v866_v13 = vadd.f32 %v850_v1, %v834_v6  ;;  %v257_v34 = vpop.f32.mrf.mxu0  ;;  %v641_v35 = vpop.f32.mrf.mxu2 }
 0x1fd   :  { %v387_v45 = vpop.f32.mrf.mxu1  ;;  %v827_v62 = vmul.f32 0.125, %v641_v35 }
 0x1fe   :  { %v417_v16 = vsub.f32 %v242_v46, %v387_v45  ;;  %v882_v21 = vmul.f32 %v866_v13, %v866_v13 }
 0x200   :  { %v838_v31 = vsub.f32 %v417_v16, %v822_v23  ;;  %v897_v36 = vadd.f32 %v896_v39, %v882_v21 }
 0x201   :  { %v767_v44 = vpop.f32.mrf.mxu3 }
 0x202   :  { %v851_v8 = vmul.f32 0.125, %v767_v44  ;;  %v825_v44 = vmul.f32 0.125, %v635_v60 }
 0x204   :  { %v867_v20 = vadd.f32 %v851_v8, %v835_v11  ;;  %v260_v6 = vpop.f32.mrf.mxu0 }
 0x205   :  { %v390_v49 = vpop.f32.mrf.mxu1 }
 0x206   :  { %v418_v24 = vsub.f32 %v245_v51, %v390_v49  ;;  %v883_v26 = vmul.f32 %v867_v20, %v867_v20  ;;  %v826_v51 = vmul.f32 0.125, %v638_v5  ;;  %v644_v5 = vpop.f32.mrf.mxu2 }
 0x207   :  { %v828_v11 = vmul.f32 0.125, %v644_v5 }
 0x208   :  { %v839_v41 = vsub.f32 %v418_v24, %v823_v30  ;;  %v898_v45 = vadd.f32 %v897_v36, %v883_v26 }
 0x209   :  { %v770_v48 = vpop.f32.mrf.mxu3 }
 0x20a   :  { %v852_v14 = vmul.f32 0.125, %v770_v48 }
 0x20c   :  { %v868_v22 = vadd.f32 %v852_v14, %v836_v19 }
 0x20d   :  { %v393_v54 = vpop.f32.mrf.mxu1 }
 0x20e   :  { %v419_v32 = vsub.f32 %v248_v55, %v393_v54  ;;  %v884_v37 = vmul.f32 %v868_v22, %v868_v22 }
 0x210   :  { %v840_v47 = vsub.f32 %v419_v32, %v824_v40  ;;  %v899_v52 = vadd.f32 %v898_v45, %v884_v37 }
 0x211   :  { %v773_v50 = vpop.f32.mrf.mxu3 }
 0x212   :  { %v853_v15 = vmul.f32 0.125, %v773_v50 }
 0x214   :  { %v869_v27 = vadd.f32 %v853_v15, %v837_v18 }
 0x215   :  { %v396_v58 = vpop.f32.mrf.mxu1 }
 0x216   :  { %v420_v38 = vsub.f32 %v251_v59, %v396_v58  ;;  %v885_v46 = vmul.f32 %v869_v27, %v869_v27 }
 0x218   :  { %v900_v58 = vadd.f32 %v899_v52, %v885_v46 }
 0x219   :  { %v776_v53 = vpop.f32.mrf.mxu3 }
 0x21a   :  { %v854_v25 = vmul.f32 0.125, %v776_v53  ;;  %v841_v53 = vsub.f32 %v420_v38, %v825_v44 }
 0x21c   :  { %v870_v42 = vadd.f32 %v854_v25, %v838_v31 }
 0x21d   :  { %v399_v2 = vpop.f32.mrf.mxu1 }
 0x21e   :  { %v421_v48 = vsub.f32 %v254_v3, %v399_v2  ;;  %v886_v54 = vmul.f32 %v870_v42, %v870_v42 }
 0x220   :  { %v842_v59 = vsub.f32 %v421_v48, %v826_v51  ;;  %v901_v1 = vadd.f32 %v900_v58, %v886_v54 }
 0x221   :  { %v779_v57 = vpop.f32.mrf.mxu3 }
 0x222   :  { %v855_v33 = vmul.f32 0.125, %v779_v57 }
 0x224   :  { %v871_v49 = vadd.f32 %v855_v33, %v839_v41 }
 0x225   :  { %v402_v28 = vpop.f32.mrf.mxu1 }
 0x226   :  { %v422_v55 = vsub.f32 %v257_v34, %v402_v28  ;;  %v887_v63 = vmul.f32 %v871_v49, %v871_v49 }
 0x228   :  { %v843_v4 = vsub.f32 %v422_v55, %v827_v62  ;;  %v902_v7 = vadd.f32 %v901_v1, %v887_v63 }
 0x229   :  { %v782_v61 = vpop.f32.mrf.mxu3 }
 0x22a   :  { %v856_v43 = vmul.f32 0.125, %v782_v61 }
 0x22c   :  { %v872_v57 = vadd.f32 %v856_v43, %v840_v47 }
 0x22d   :  { %v405_v0 = vpop.f32.mrf.mxu1 }
 0x22e   :  { %v888_v2 = vmul.f32 %v872_v57, %v872_v57  ;;  %v423_v8 = vsub.f32 %v260_v6, %v405_v0 }
 0x230   :  { %v903_v12 = vadd.f32 %v902_v7, %v888_v2  ;;  %v844_v17 = vsub.f32 %v423_v8, %v828_v11 }
 0x231   :  { %v785_v9 = vpop.f32.mrf.mxu3 }
 0x232   :  { %v857_v50 = vmul.f32 0.125, %v785_v9 }
 0x234   :  { %v873_v61 = vadd.f32 %v857_v50, %v841_v53 }
 0x236   :  { %v889_v9 = vmul.f32 %v873_v61, %v873_v61 }
 0x238   :  { %v904_v19 = vadd.f32 %v903_v12, %v889_v9 }
 0x239   :  { %v788_v29 = vpop.f32.mrf.mxu3 }
 0x23a   :  { %v858_v39 = vmul.f32 0.125, %v788_v29 }
 0x23c   :  { %v874_v3 = vadd.f32 %v858_v39, %v842_v59 }
 0x23e   :  { %v890_v13 = vmul.f32 %v874_v3, %v874_v3 }
 0x240   :  { %v905_v16 = vadd.f32 %v904_v19, %v890_v13 }
 0x241   :  { %v791_v56 = vpop.f32.mrf.mxu3 }
 0x242   :  { %v859_v60 = vmul.f32 0.125, %v791_v56 }
 0x244   :  { %v875_v10 = vadd.f32 %v859_v60, %v843_v4 }
 0x246   :  { %v891_v20 = vmul.f32 %v875_v10, %v875_v10 }
 0x248   :  { %v906_v21 = vadd.f32 %v905_v16, %v891_v20 }
 0x249   :  { %v794_v14 = vpop.f32.mrf.mxu3 }
 0x24a   :  { %v860_v15 = vmul.f32 0.125, %v794_v14 }
 0x24c   :  { %v876_v18 = vadd.f32 %v860_v15, %v844_v17 }
 0x24e   :  { %v892_v22 = vmul.f32 %v876_v18, %v876_v18 }
 0x250   :  { %v907_v23 = vadd.f32 %v906_v21, %v892_v22 }
 0x252   :  { %v908_v24 = vrot.slane %v907_v23, 4 }
 0x254   :  { %v909_v25 = vadd.f32 %v908_v24, %v907_v23 }
 0x256   :  { %v910_v26 = vrot.slane %v909_v25, 2 }
 0x258   :  { %v911_v27 = vadd.f32 %v910_v26, %v909_v25 }
 0x25a   :  { %v912_v28 = vrot.slane %v911_v27, 1 }
 0x25c   :  { %v913_v29 = vadd.f32 %v912_v28, %v911_v27 }
 0x25e   :  { %914 = vadd.xlane.f32.xlu2 %v913_v29 }
 0x2d1   :  { %v915_v30 = vpop.xlane.xlu2 %914 }
 0x2d2   :  { %v916_v31 = vmul.f32 2.3841858e-07, %v915_v30 }
 0x2d4   :  { %917 = vst [vmem:[#allocation15] sm:$0xff] %v916_v31 }
 0x2d5   :  { %928 = dma.vmem_to_hbm [thread:$0]  %s924_s3, 128, %s926_s9, [#allocation9]  }
 0x2d6   :  { %1135 = dma.done.wait [#allocation9], 128  }
 0x2d7   :  { %1136 = vsyncadd [#allocation9], 4294967168 }
 0x2d8   :  { %933 = vsyncpa [#allocation8], 1 }
 0x2d9   :  { %934 = vsyncpa [#allocation11], 1 }
 0x2da   :  { %935 = vsyncpa [#allocation14], 1 }
 0x2db   :  { %936 = vsyncpa [#allocation9], 1 }

</bundles_post_ra>
